<compile_context>
chip_gen: v5e
topology: v5e:2x2
jax: 0.10.0
libtpu: 0.0.40
codegen_flags: <defaults>
</compile_context>

<pallas_src>
import jax
import jax.numpy as jnp
from jax.experimental import pallas as pl
from jax.experimental.pallas import tpu as pltpu


def _rnd_kernel(x_ref, w1_ref, b1_ref, w2p_ref, b2p_ref, w2t_ref, b2t_ref,
                op_ref, ot_ref):
    """Fused predictor+target MLP for one batch tile.

    x_ref   : (bb, K)      f32    shared input tile (cast to bf16 in-kernel)
    w1_ref  : (K, 2H)      bf16   [W1_pred | W1_targ]
    b1_ref  : (1, 2H)      f32    [b1_pred | b1_targ]
    w2*_ref : (H, H)       bf16   per-network second layer
    b2*_ref : (1, H)       f32
    o*_ref  : (bb, H)      f32    per-network output tile
    """
    H = w2p_ref.shape[0]

    # In-kernel cast: x travels HBM->VMEM as f32 exactly once; the VPU cast is free
    # under the memory-bound roofline.
    x = x_ref[...].astype(w1_ref.dtype)

    # Layer 1 for BOTH networks in one MXU pass: (bb, K) @ (K, 2H), f32 accumulate.
    h = jnp.dot(x, w1_ref[...], preferred_element_type=jnp.float32) + b1_ref[...]
    h = jnp.maximum(h, 0.0).astype(w2p_ref.dtype)  # back to bf16 for the second matmul

    # Layer 2 per network.  Slices land exactly on 128-lane boundaries (H == 128),
    # so they are free vreg-aligned views, no relayout.
    yp = jnp.dot(h[:, :H], w2p_ref[...], preferred_element_type=jnp.float32) + b2p_ref[...]
    yt = jnp.dot(h[:, H:], w2t_ref[...], preferred_element_type=jnp.float32) + b2t_ref[...]

    op_ref[...] = yp.astype(op_ref.dtype)
    ot_ref[...] = yt.astype(ot_ref.dtype)


def prepare_rnd_params(predictor_params, target_params, compute_dtype=jnp.bfloat16):
    """One-time packing of the (static / frozen) weights into the kernel layout.

    Hoisted out of rnd_forward so concat/cast HLOs don't run on every forward call.
    Returns (w1_cat_bf16, b1_cat_f32, w2p_bf16, b2p_f32, w2t_bf16, b2t_f32).
    """
    w1p, b1p, w2p, b2p = predictor_params
    w1t, b1t, w2t, b2t = target_params
    w1_cat = jnp.concatenate([w1p, w1t], axis=1).astype(compute_dtype)
    b1_cat = jnp.concatenate([b1p, b1t], axis=1).astype(jnp.float32)
    return (w1_cat, b1_cat,
            w2p.astype(compute_dtype), b2p.astype(jnp.float32),
            w2t.astype(compute_dtype), b2t.astype(jnp.float32))


def _choose_block_b(B, block_b):
    """Pick the batch tile: large tiles, but >= 2 tiles when possible (v7x megacore)."""
    if B <= 8:
        return B                      # single full-batch tile (bb == full dim is legal)
    half = -(-B // 2)                 # ceil(B / 2)
    bb = ((half + 7) // 8) * 8        # round up to sublane multiple of 8
    bb = min(bb, block_b)
    if bb >= B:                       # can't split without violating the 8-row rule
        return B
    return bb


def rnd_forward(x, packed_params, *, block_b=2048):
    """RNDModule.forward: returns (predictor_out, target_out) as float32 arrays.

    `packed_params` must come from prepare_rnd_params().
    """
    w1_cat, b1_cat, w2p_c, b2p_c, w2t_c, b2t_c = packed_params

    B, D_in = x.shape
    H2 = w1_cat.shape[1]
    H = H2 // 2

    bb = _choose_block_b(B, block_b)
    n_tiles = pl.cdiv(B, bb)          # last tile may be partial -> masked by Pallas
    grid = (n_tiles,)

    # ---- Advisory cost estimate for XLA scheduling around the custom call. ----
    flops = 2 * B * D_in * H2 + 2 * 2 * B * H * H
    inputs = (x, w1_cat, b1_cat, w2p_c, b2p_c, w2t_c, b2t_c)
    bytes_accessed = sum(int(a.size) * a.dtype.itemsize for a in inputs)
    bytes_accessed += 2 * B * H * 4   # two f32 outputs
    cost = pl.CostEstimate(flops=flops, transcendentals=0,
                           bytes_accessed=bytes_accessed)

    out_shape = (jax.ShapeDtypeStruct((B, H), jnp.float32),
                 jax.ShapeDtypeStruct((B, H), jnp.float32))

    pred, targ = pl.pallas_call(
        _rnd_kernel,
        out_shape=out_shape,
        grid_spec=pltpu.PrefetchScalarGridSpec(
            num_scalar_prefetch=0,
            grid=grid,
            in_specs=[
                pl.BlockSpec((bb, D_in), lambda i: (i, 0)),    # x tile (f32, streamed)
                pl.BlockSpec((D_in, H2), lambda i: (0, 0)),    # W1_cat (resident)
                pl.BlockSpec((1, H2), lambda i: (0, 0)),       # b1_cat (resident)
                pl.BlockSpec((H, H), lambda i: (0, 0)),        # W2 predictor
                pl.BlockSpec((1, H), lambda i: (0, 0)),        # b2 predictor
                pl.BlockSpec((H, H), lambda i: (0, 0)),        # W2 target
                pl.BlockSpec((1, H), lambda i: (0, 0)),        # b2 target
            ],
            out_specs=[
                pl.BlockSpec((bb, H), lambda i: (i, 0)),       # predictor out
                pl.BlockSpec((bb, H), lambda i: (i, 0)),       # target out
            ],
        ),
        compiler_params=pltpu.CompilerParams(
            dimension_semantics=("parallel",),
        ),
        cost_estimate=cost,
    )(x, w1_cat, b1_cat, w2p_c, b2p_c, w2t_c, b2t_c)

    return pred, targ


def init_mlp_params(key, input_dim, hidden_dim):
    """Deterministic init mimicking torch.nn.Linear default (uniform +-1/sqrt(fan_in))."""
    k1, k2, k3, k4 = jax.random.split(key, 4)
    bound1 = 1.0 / jnp.sqrt(input_dim)
    bound2 = 1.0 / jnp.sqrt(hidden_dim)
    # weights stored as (in_features, out_features)
    w1 = jax.random.uniform(k1, (input_dim, hidden_dim), jnp.float32, -bound1, bound1)
    b1 = jax.random.uniform(k2, (1, hidden_dim), jnp.float32, -bound1, bound1)
    w2 = jax.random.uniform(k3, (hidden_dim, hidden_dim), jnp.float32, -bound2, bound2)
    b2 = jax.random.uniform(k4, (1, hidden_dim), jnp.float32, -bound2, bound2)
    return w1, b1, w2, b2


if __name__ == "__main__":
    key = jax.random.PRNGKey(0)
    k_x, k_pred, k_targ = jax.random.split(key, 3)

    batch = 8
    input_dim = 32
    hidden_dim = 128

    x = jax.random.normal(k_x, (batch, input_dim), jnp.float32)
    predictor_params = init_mlp_params(k_pred, input_dim, hidden_dim)
    target_params = init_mlp_params(k_targ, input_dim, hidden_dim)  # frozen in torch

    # One-time weight packing (hoisted out of the per-call path).
    packed = prepare_rnd_params(predictor_params, target_params)
    packed = jax.tree_util.tree_map(jax.block_until_ready, packed)

    pred_out, targ_out = rnd_forward(x, packed)
    jax.block_until_ready((pred_out, targ_out))

    # Reference check against plain f32 JAX (kernel uses bf16 operands + f32 accum,
    # so tolerances are relaxed accordingly).
    def ref_mlp(x, w1, b1, w2, b2):
        h = jnp.maximum(x @ w1 + b1, 0.0)
        return h @ w2 + b2

    ref_pred = ref_mlp(x, *predictor_params)
    ref_targ = ref_mlp(x, *target_params)
    assert pred_out.shape == (batch, hidden_dim) and targ_out.shape == (batch, hidden_dim)
    assert jnp.allclose(pred_out, ref_pred, atol=2e-2, rtol=2e-2)
    assert jnp.allclose(targ_out, ref_targ, atol=2e-2, rtol=2e-2)

    # Exercise a larger, non-divisible batch to cover the multi-tile + partial-tile path.
    x_big = jax.random.normal(k_x, (1000, input_dim), jnp.float32)
    pb, tb = rnd_forward(x_big, packed)
    jax.block_until_ready((pb, tb))
    assert jnp.allclose(pb, ref_mlp(x_big, *predictor_params), atol=2e-2, rtol=2e-2)
    assert jnp.allclose(tb, ref_mlp(x_big, *target_params), atol=2e-2, rtol=2e-2)

    print("KERNEL_OK")
</pallas_src>

<mosaic_0001>
module attributes {stable_mosaic.version = 11 : i64} {
  func.func @_rnd_kernel(%arg0: i32, %arg1: memref<8x32xf32, #tpu.memory_space<vmem>>, %arg2: memref<32x256xbf16, #tpu.memory_space<vmem>>, %arg3: memref<1x256xf32, #tpu.memory_space<vmem>>, %arg4: memref<128x128xbf16, #tpu.memory_space<vmem>>, %arg5: memref<1x128xf32, #tpu.memory_space<vmem>>, %arg6: memref<128x128xbf16, #tpu.memory_space<vmem>>, %arg7: memref<1x128xf32, #tpu.memory_space<vmem>>, %arg8: memref<8x128xf32, #tpu.memory_space<vmem>>, %arg9: memref<8x128xf32, #tpu.memory_space<vmem>>) attributes {dimension_semantics = [#tpu.dimension_semantics<parallel>], iteration_bounds = array<i64: 1>, scalar_prefetch = 0 : i64, scratch_operands = 0 : i64, tpu.core_type = #tpu.core_type<tc>, window_params = [{transform_indices = @transform_0, window_bounds = array<i64: 8, 32>}, {pipeline_mode = #tpu.pipeline_mode<synchronous>, transform_indices = @transform_1, window_bounds = array<i64: 32, 256>}, {pipeline_mode = #tpu.pipeline_mode<synchronous>, transform_indices = @transform_2, window_bounds = array<i64: 1, 256>}, {pipeline_mode = #tpu.pipeline_mode<synchronous>, transform_indices = @transform_3, window_bounds = array<i64: 128, 128>}, {pipeline_mode = #tpu.pipeline_mode<synchronous>, transform_indices = @transform_4, window_bounds = array<i64: 1, 128>}, {pipeline_mode = #tpu.pipeline_mode<synchronous>, transform_indices = @transform_5, window_bounds = array<i64: 128, 128>}, {pipeline_mode = #tpu.pipeline_mode<synchronous>, transform_indices = @transform_6, window_bounds = array<i64: 1, 128>}, {transform_indices = @transform_7, window_bounds = array<i64: 8, 128>}, {transform_indices = @transform_8, window_bounds = array<i64: 8, 128>}]} {
    %c0 = arith.constant 0 : index
    %c0_0 = arith.constant 0 : index
    %0 = vector.load %arg1[%c0, %c0_0] : memref<8x32xf32, #tpu.memory_space<vmem>>, vector<8x32xf32>
    %1 = arith.truncf %0 : vector<8x32xf32> to vector<8x32xbf16>
    %c0_1 = arith.constant 0 : index
    %c0_2 = arith.constant 0 : index
    %2 = vector.load %arg2[%c0_1, %c0_2] : memref<32x256xbf16, #tpu.memory_space<vmem>>, vector<32x256xbf16>
    %cst = arith.constant dense<0.000000e+00> : vector<8x256xf32>
    %3 = tpu.matmul %1, %2, %cst {dimension_numbers = #tpu.dot_dimension_numbers<[1], [0], [0], [1], [0, 0, 1, 1], [], []>} : vector<8x32xbf16>, vector<32x256xbf16>, vector<8x256xf32> -> vector<8x256xf32>
    %c0_3 = arith.constant 0 : index
    %c0_4 = arith.constant 0 : index
    %4 = vector.load %arg3[%c0_3, %c0_4] : memref<1x256xf32, #tpu.memory_space<vmem>>, vector<1x256xf32>
    %5 = vector.broadcast %4 : vector<1x256xf32> to vector<8x256xf32>
    %6 = arith.addf %3, %5 : vector<8x256xf32>
    %cst_5 = arith.constant 0.000000e+00 : f32
    %7 = vector.broadcast %cst_5 : f32 to vector<8x256xf32>
    %8 = arith.maximumf %6, %7 : vector<8x256xf32>
    %9 = arith.truncf %8 : vector<8x256xf32> to vector<8x256xbf16>
    %10 = vector.extract_strided_slice %9 {offsets = [0, 0], sizes = [8, 128], strides = [1, 1]} : vector<8x256xbf16> to vector<8x128xbf16>
    %c0_6 = arith.constant 0 : index
    %c0_7 = arith.constant 0 : index
    %11 = vector.load %arg4[%c0_6, %c0_7] : memref<128x128xbf16, #tpu.memory_space<vmem>>, vector<128x128xbf16>
    %cst_8 = arith.constant dense<0.000000e+00> : vector<8x128xf32>
    %12 = tpu.matmul %10, %11, %cst_8 {dimension_numbers = #tpu.dot_dimension_numbers<[1], [0], [0], [1], [0, 0, 1, 1], [], []>} : vector<8x128xbf16>, vector<128x128xbf16>, vector<8x128xf32> -> vector<8x128xf32>
    %c0_9 = arith.constant 0 : index
    %c0_10 = arith.constant 0 : index
    %13 = vector.load %arg5[%c0_9, %c0_10] : memref<1x128xf32, #tpu.memory_space<vmem>>, vector<1x128xf32>
    %14 = vector.broadcast %13 : vector<1x128xf32> to vector<8x128xf32>
    %15 = arith.addf %12, %14 : vector<8x128xf32>
    %16 = vector.extract_strided_slice %9 {offsets = [0, 128], sizes = [8, 128], strides = [1, 1]} : vector<8x256xbf16> to vector<8x128xbf16>
    %c0_11 = arith.constant 0 : index
    %c0_12 = arith.constant 0 : index
    %17 = vector.load %arg6[%c0_11, %c0_12] : memref<128x128xbf16, #tpu.memory_space<vmem>>, vector<128x128xbf16>
    %cst_13 = arith.constant dense<0.000000e+00> : vector<8x128xf32>
    %18 = tpu.matmul %16, %17, %cst_13 {dimension_numbers = #tpu.dot_dimension_numbers<[1], [0], [0], [1], [0, 0, 1, 1], [], []>} : vector<8x128xbf16>, vector<128x128xbf16>, vector<8x128xf32> -> vector<8x128xf32>
    %c0_14 = arith.constant 0 : index
    %c0_15 = arith.constant 0 : index
    %19 = vector.load %arg7[%c0_14, %c0_15] : memref<1x128xf32, #tpu.memory_space<vmem>>, vector<1x128xf32>
    %20 = vector.broadcast %19 : vector<1x128xf32> to vector<8x128xf32>
    %21 = arith.addf %18, %20 : vector<8x128xf32>
    %c0_16 = arith.constant 0 : index
    %c0_17 = arith.constant 0 : index
    %22 = vector.load %arg8[%c0_16, %c0_17] : memref<8x128xf32, #tpu.memory_space<vmem>>, vector<8x128xf32>
    tpu.vector_store %arg8[%c0_16, %c0_17], %15 {strides = array<i32>} : memref<8x128xf32, #tpu.memory_space<vmem>>, vector<8x128xf32>,
    %c0_18 = arith.constant 0 : index
    %c0_19 = arith.constant 0 : index
    %23 = vector.load %arg9[%c0_18, %c0_19] : memref<8x128xf32, #tpu.memory_space<vmem>>, vector<8x128xf32>
    tpu.vector_store %arg9[%c0_18, %c0_19], %21 {strides = array<i32>} : memref<8x128xf32, #tpu.memory_space<vmem>>, vector<8x128xf32>,
    return
  }
  func.func @transform_0(%arg0: i32) -> (i32, i32) {
    %c0_i32 = arith.constant 0 : i32
    %c0_i32_0 = arith.constant 0 : i32
    return %arg0, %c0_i32 : i32, i32
  }
  func.func @transform_1(%arg0: i32) -> (i32, i32) {
    %c0_i32 = arith.constant 0 : i32
    %c0_i32_0 = arith.constant 0 : i32
    %c0_i32_1 = arith.constant 0 : i32
    return %c0_i32, %c0_i32_0 : i32, i32
  }
  func.func @transform_2(%arg0: i32) -> (i32, i32) {
    %c0_i32 = arith.constant 0 : i32
    %c0_i32_0 = arith.constant 0 : i32
    %c0_i32_1 = arith.constant 0 : i32
    return %c0_i32, %c0_i32_0 : i32, i32
  }
  func.func @transform_3(%arg0: i32) -> (i32, i32) {
    %c0_i32 = arith.constant 0 : i32
    %c0_i32_0 = arith.constant 0 : i32
    %c0_i32_1 = arith.constant 0 : i32
    return %c0_i32, %c0_i32_0 : i32, i32
  }
  func.func @transform_4(%arg0: i32) -> (i32, i32) {
    %c0_i32 = arith.constant 0 : i32
    %c0_i32_0 = arith.constant 0 : i32
    %c0_i32_1 = arith.constant 0 : i32
    return %c0_i32, %c0_i32_0 : i32, i32
  }
  func.func @transform_5(%arg0: i32) -> (i32, i32) {
    %c0_i32 = arith.constant 0 : i32
    %c0_i32_0 = arith.constant 0 : i32
    %c0_i32_1 = arith.constant 0 : i32
    return %c0_i32, %c0_i32_0 : i32, i32
  }
  func.func @transform_6(%arg0: i32) -> (i32, i32) {
    %c0_i32 = arith.constant 0 : i32
    %c0_i32_0 = arith.constant 0 : i32
    %c0_i32_1 = arith.constant 0 : i32
    return %c0_i32, %c0_i32_0 : i32, i32
  }
  func.func @transform_7(%arg0: i32) -> (i32, i32) {
    %c0_i32 = arith.constant 0 : i32
    %c0_i32_0 = arith.constant 0 : i32
    return %arg0, %c0_i32 : i32, i32
  }
  func.func @transform_8(%arg0: i32) -> (i32, i32) {
    %c0_i32 = arith.constant 0 : i32
    %c0_i32_0 = arith.constant 0 : i32
    return %arg0, %c0_i32 : i32, i32
  }
}

</mosaic_0001>

<bundles_post_ra>
// kernel: tpu_custom_call.1
= control target key start
LH: loop header
LB: loop body
LE: loop exit
PB: predicated region body
PF: predicated region fallthrough
CT: control target
= control target key end

     0   :  { %14 = vsyncpa [#allocation3], 0  ;;  %s749_s0 = inlined_call_operand.hbm [shape: f32[8,32], index: 0, kind: input, shape index: {}]   ;;  %s750_s1 = inlined_call_operand.hbm [shape: bf16[32,256], index: 1, kind: input, shape index: {}]   ;;  %s751_s2 = inlined_call_operand.hbm [shape: f32[1,256], index: 2, kind: input, shape index: {}]   ;;  %s752_s3 = inlined_call_operand.hbm [shape: bf16[128,128], index: 3, kind: input, shape index: {}]   ;;  %s753_s4 = inlined_call_operand.vmem [shape: f32[1,128], index: 4, kind: input, shape index: {}]   ;;  %s754_s5 = inlined_call_operand.hbm [shape: bf16[128,128], index: 5, kind: input, shape index: {}]   ;;  %s755_s6 = inlined_call_operand.vmem [shape: f32[1,128], index: 6, kind: input, shape index: {}]   ;;  %s756_s7 = inlined_call_operand.hbm [shape: f32[8,128], index: 7, kind: output, shape index: {0}]   ;;  %s757_s8 = inlined_call_operand.hbm [shape: f32[8,128], index: 8, kind: output, shape index: {1}]  }
   0x1   :  { %15 = vsyncpa [#allocation6], 0 }
   0x2   :  { %16 = vsyncpa [#allocation9], 0 }
   0x3   :  { %17 = vsyncpa [#allocation4], 0  ;;  %s34_s29 = sshll.u32 %s750_s1, 4  ;;  %s35_s29 = int_to_ptr.hbm [resolvable:$true] %s34_s29 }
   0x4   :  { %18 = vsyncpa [#allocation13], 0  ;;  %s666_s30 = smov [#allocation5]   ;;  %s58_s12 = sshll.u32 %s752_s3, 4  ;;  %s59_s12 = int_to_ptr.hbm [resolvable:$true] %s58_s12 }
   0x5   :  { %s36_s9 = sshll.u32 %s666_s30, 4  ;;  %s667_s13 = smov 128   ;;  %s37_s9 = int_to_ptr.vmem [resolvable:$true] %s36_s9 }
   0x6   :  { %s668_s14 = smov 8   ;;  %s669_s15 = smov [#allocation8]  }
   0x7   :  { %42 = dma.hbm_to_vmem [thread:$0]  %s35_s29, 512, %s37_s9, [#allocation6], %s667_s13, %s667_s13, %s668_s14  }
   0x8   :  { %s60_s16 = sshll.u32 %s669_s15, 4  ;;  %s670_s17 = smov 64   ;;  %s61_s16 = int_to_ptr.vmem [resolvable:$true] %s60_s16 }
   0x9   :  { %s671_s18 = smov 4   ;;  %s24_s20 = sshll.u32 %s749_s0, 4  ;;  %s25_s20 = int_to_ptr.hbm [resolvable:$true] %s24_s20 }
   0xa   :  { %66 = dma.hbm_to_vmem [thread:$0]  %s59_s12, 1024, %s61_s16, [#allocation9], %s670_s17, %s670_s17, %s671_s18  }
   0xb   :  { %s672_s21 = smov [#allocation2]   ;;  %s48_s24 = sshll.u32 %s751_s2, 4  ;;  %s49_s24 = int_to_ptr.hbm [resolvable:$true] %s48_s24 }
   0xc   :  { %s26_s22 = sshll.u32 %s672_s21, 4  ;;  %s673_s25 = smov [#allocation7]   ;;  %s27_s22 = int_to_ptr.vmem [resolvable:$true] %s26_s22 }
   0xd   :  { %29 = dma.hbm_to_vmem [thread:$0]  %s25_s20, 128, %s27_s22, [#allocation3]  }
   0xe   :  { %s50_s26 = sshll.u32 %s673_s25, 4  ;;  %s73_s29 = sshll.u32 %s754_s5, 4  ;;  %s51_s26 = int_to_ptr.vmem [resolvable:$true] %s50_s26  ;;  %s74_s29 = int_to_ptr.hbm [resolvable:$true] %s73_s29 }
   0xf   :  { %53 = dma.hbm_to_vmem [thread:$0]  %s49_s24, 32, %s51_s26, [#allocation6]  }
  0x10   :  { %s674_s0 = smov [#allocation10]  }
  0x11   :  { %s75_s30 = sshll.u32 %s674_s0, 4  ;;  %s76_s30 = int_to_ptr.vmem [resolvable:$true] %s75_s30 }
  0x12   :  { %81 = dma.hbm_to_vmem [thread:$0]  %s74_s29, 1024, %s76_s30, [#allocation9], %s670_s17, %s670_s17, %s671_s18  }
  0x13   :  { %656 = dma.done.wait [#allocation3], 128  }
  0x14   :  { %657 = vsyncadd [#allocation3], 4294967168 }
  0x15   :  { %658 = dma.done.wait [#allocation6], 544  }
  0x16   :  { %659 = vsyncadd [#allocation6], 4294966752 }
  0x17   :  { %660 = dma.done.wait [#allocation9], 2048  }
  0x18   :  { %661 = vsyncadd [#allocation9], 4294965248  ;;  %v383_v0 = vld [vmem:[#allocation5 + $0x10] sm:$0xf]  ;;  %v458_v1 = vld [vmem:[#allocation5 + $0x14] sm:$0xf0] }
  0x19   :  { %v457_v2 = vld [vmem:[#allocation5 + $0x14] sm:$0xf]  ;;  %v384_v3 = vor.u32 %v458_v1, %v383_v0  ;;  %v385_v4 = vld [vmem:[#allocation5 + $0x18] sm:$0xf0]  ;;  %v375_v5 = vld [vmem:[#allocation5] sm:$0xf] }
  0x1a   :  { %v456_v6 = vld [vmem:[#allocation5 + $0x4] sm:$0xf0]  ;;  %v388_v7 = vor.u32 %v457_v2, %v385_v4  ;;  %v455_v8 = vld [vmem:[#allocation5 + $0x4] sm:$0xf]  ;;  %v377_v9 = vld [vmem:[#allocation5 + $0x8] sm:$0xf0] }
  0x1b   :  { %147 = vmatpush.bf16.msra.mxu0 %v384_v3  ;;  %v376_v10 = vor.u32 %v456_v6, %v375_v5  ;;  %v105_v11 = vld [vmem:[#allocation2] sm:$0xff]  ;;  %v380_v14 = vor.u32 %v455_v8, %v377_v9  ;;  %vm137_vm0 = vcmask 261120   ;;  %v464_v18 = vld [vmem:[#allocation8 + $0x28] sm:$0xff]  ;;  %v463_v20 = vld [vmem:[#allocation8 + $0x20] sm:$0xff]  ;;  %s675_s9 = smov [#allocation11]   ;;  %s345_s13 = sshll.u32 %s756_s7, 4  ;;  %s346_s13 = int_to_ptr.hbm [resolvable:$true] %s345_s13 }
  0x1c   :  { %v466_v12 = vld [vmem:[#allocation8 + $0x38] sm:$0xff]  ;;  %160 = vmatpush.bf16.msra.mxu1 %v388_v7  ;;  %v465_v15 = vld [vmem:[#allocation8 + $0x30] sm:$0xff]  ;;  %v106_v17 = vpack.c.bf16 %v105_v11, %v105_v11  ;;  %v472_v19 = vld [vmem:[#allocation10 + $0x28] sm:$0xff]  ;;  %s343_s10 = sshll.u32 %s675_s9, 4  ;;  %s676_s16 = smov [#allocation12]   ;;  %s344_s10 = int_to_ptr.vmem [resolvable:$true] %s343_s10 }
  0x1d   :  { %v474_v13 = vld [vmem:[#allocation10 + $0x38] sm:$0xff]  ;;  %238 = vmatpush.bf16.msra.mxu2 %v466_v12  ;;  %v473_v16 = vld [vmem:[#allocation10 + $0x30] sm:$0xff]  ;;  %v471_v21 = vld [vmem:[#allocation10 + $0x20] sm:$0xff]  ;;  %s354_s17 = sshll.u32 %s676_s16, 4  ;;  %s355_s17 = int_to_ptr.vmem [resolvable:$true] %s354_s17 }
  0x1e   :  { %323 = vmatpush.bf16.msra.mxu3 %v474_v13  ;;  %v462_v22 = vld [vmem:[#allocation8 + $0x18] sm:$0xff]  ;;  %v461_v24 = vld [vmem:[#allocation8 + $0x10] sm:$0xff]  ;;  %v460_v25 = vld [vmem:[#allocation8 + $0x8] sm:$0xff] }
  0x1f   :  { %148 = vmatpush.bf16.msra.mxu0 %v376_v10  ;;  %v470_v23 = vld [vmem:[#allocation10 + $0x18] sm:$0xff]  ;;  %v469_v26 = vld [vmem:[#allocation10 + $0x10] sm:$0xff]  ;;  %v459_v27 = vld [vmem:[#allocation8] sm:$0xff] }
  0x20   :  { %161 = vmatpush.bf16.msra.mxu1 %v380_v14  ;;  %v468_v28 = vld [vmem:[#allocation10 + $0x8] sm:$0xff]  ;;  %v467_v29 = vld [vmem:[#allocation10] sm:$0xff]  ;;  %v111_v30 = vld [vmem:[#allocation7] sm:$0x3] }
  0x21   :  { %239 = vmatpush.bf16.msra.mxu2 %v465_v15  ;;  %v113_v31 = vperm.slane %v111_v30, 0  ;;  %v114_v32 = vperm.slane %v111_v30, 1  ;;  %v486_v44 = vld [vmem:[%s753_s4] ss:$0 sm:$0xff]  ;;  %s356_s4 = sshll.u32 %s757_s8, 4  ;;  %s357_s4 = int_to_ptr.hbm [resolvable:$true] %s356_s4 }
  0x22   :  { %324 = vmatpush.bf16.msra.mxu3 %v473_v16  ;;  %389 = vmatmul.msk.bf16.vlgmr.msra.gmra.mxu0 %vm137_vm0, %v106_v17  ;;  %v487_v47 = vld [vmem:[%s755_s6] ss:$0 sm:$0xff] }
  0x23   :  { %390 = vmatmul.msk.bf16.vlgmr.msra.gmra.mxu1 %vm137_vm0, %v106_v17 }
  0x25   :  { %240 = vmatpush.bf16.msra.mxu2 %v464_v18 }
  0x26   :  { %325 = vmatpush.bf16.msra.mxu3 %v472_v19 }
  0x29   :  { %241 = vmatpush.bf16.msra.mxu2 %v463_v20 }
  0x2a   :  { %326 = vmatpush.bf16.msra.mxu3 %v471_v21 }
  0x2d   :  { %242 = vmatpush.bf16.msra.mxu2 %v462_v22 }
  0x2e   :  { %327 = vmatpush.bf16.msra.mxu3 %v470_v23 }
  0x31   :  { %243 = vmatpush.bf16.msra.mxu2 %v461_v24 }
  0x32   :  { %328 = vmatpush.bf16.msra.mxu3 %v469_v26 }
  0x35   :  { %244 = vmatpush.bf16.msra.mxu2 %v460_v25 }
  0x36   :  { %329 = vmatpush.bf16.msra.mxu3 %v468_v28 }
  0x39   :  { %245 = vmatpush.bf16.msra.mxu2 %v459_v27 }
  0x3a   :  { %330 = vmatpush.bf16.msra.mxu3 %v467_v29 }
  0x9f   :  { %v150_v33 = vpop.f32.mrf.mxu0 }
  0xa0   :  { %v151_v34 = vadd.f32 %v150_v33, %v113_v31  ;;  %v163_v35 = vpop.f32.mrf.mxu1 }
  0xa1   :  { %v164_v36 = vadd.f32 %v163_v35, %v114_v32 }
  0xa2   :  { %v167_v37 = vmax.f32 %v151_v34, 0.0 }
  0xa3   :  { %v168_v38 = vmax.f32 %v164_v36, 0.0 }
  0xa5   :  { %v169_v39 = vpack.c.bf16 %v168_v38, %v167_v37 }
  0xa7   :  { %246 = vmatmul.bf16.vlgmr.msra.gmra.mxu2 %v169_v39  ;;  %v152_v40 = vpop.f32.mrf.mxu0  ;;  %v272_v41 = vunpack.c.h.b16 %v169_v39 }
  0xa8   :  { %v165_v42 = vpop.f32.mrf.mxu1 }
  0xa9   :  { %v273_v43 = vpack.c.b16 %v272_v41, %v272_v41 }
  0xab   :  { %331 = vmatmul.bf16.vlgmr.msra.gmra.mxu3 %v273_v43 }
 0x12a   :  { %v247_v45 = vpop.f32.mrf.mxu2 }
 0x12b   :  { %v248_v46 = vadd.f32 %v486_v44, %v247_v45 }
 0x12d   :  { %336 = vst [vmem:[#allocation11] sm:$0xff] %v248_v46 }
 0x12e   :  { %v332_v48 = vpop.f32.mrf.mxu3  ;;  %348 = dma.vmem_to_hbm [thread:$0]  %s344_s10, 128, %s346_s13, [#allocation4]  }
 0x12f   :  { %v333_v49 = vadd.f32 %v487_v47, %v332_v48 }
 0x131   :  { %337 = vst [vmem:[#allocation12] sm:$0xff] %v333_v49 }
 0x132   :  { %v249_v50 = vpop.f32.mrf.mxu2  ;;  %359 = dma.vmem_to_hbm [thread:$0]  %s355_s17, 128, %s357_s4, [#allocation13]  }
 0x136   :  { %v334_v51 = vpop.f32.mrf.mxu3 }
 0x137   :  { %662 = dma.done.wait [#allocation4], 128  }
 0x138   :  { %663 = vsyncadd [#allocation4], 4294967168 }
 0x139   :  { %664 = dma.done.wait [#allocation13], 128  }
 0x13a   :  { %665 = vsyncadd [#allocation13], 4294967168 }
 0x13b   :  { %368 = vsyncpa [#allocation3], 1 }
 0x13c   :  { %369 = vsyncpa [#allocation6], 1 }
 0x13d   :  { %370 = vsyncpa [#allocation9], 1 }
 0x13e   :  { %371 = vsyncpa [#allocation4], 1 }
 0x13f   :  { %372 = vsyncpa [#allocation13], 1 }

</bundles_post_ra>
